<compile_context>
chip_gen: v5e
topology: v5e:2x2
jax: 0.10.0
libtpu: 0.0.40
codegen_flags: <defaults>
</compile_context>

<pallas_src>
import jax
import jax.numpy as jnp
from jax.experimental import pallas as pl
from jax.experimental.pallas import tpu as pltpu


_LANES = 512                    # lane-dense last dim (multiple of 128)
_TARGET_BLOCK_BYTES = 1 << 20   # ~1 MiB per block


def _identity_kernel(x_ref, o_ref):
    # Elementwise copy of the current VMEM tile.
    o_ref[...] = x_ref[...]


def identity_pallas(x):
    """Identity forward pass: returns x unchanged (same shape, same dtype)."""
    orig_shape = x.shape
    orig_dtype = x.dtype
    n = x.size
    if n == 0:
        return x

    itemsize = jnp.dtype(orig_dtype).itemsize

    # Wide lane-dense columns (multiple of 128) -> unmasked stores, big DMAs.
    cols = _LANES
    # Native sublane tile: 8 for 32-bit, 16 for 16-bit, 32 for 8-bit dtypes.
    sublane = max(8, 32 // max(itemsize, 1))

    # Minimal alignment pad: make the flat length reshape into full
    # (sublane, cols)-aligned rows.
    min_chunk = cols * sublane
    n_min = n + ((-n) % min_chunk)
    rows_min = n_min // cols

    # Row tile: aim for ~1 MiB per block, multiple of the sublane tile,
    # never larger than the (minimally padded) array itself.
    row_bytes = cols * itemsize
    tr = (_TARGET_BLOCK_BYTES // row_bytes) // sublane * sublane
    tr = max(sublane, min(tr, rows_min))

    # Final pad so rows is an exact multiple of tr: every block is full,
    # every vst unmasked, every DMA rectangular and aligned.
    chunk = tr * cols
    n_pad = (-n) % chunk

    flat = x.reshape(-1)
    if n_pad:
        flat = jnp.concatenate([flat, jnp.zeros((n_pad,), dtype=orig_dtype)])
    rows = (n + n_pad) // cols
    x2d = flat.reshape(rows, cols)

    grid = (rows // tr,)

    out2d = pl.pallas_call(
        _identity_kernel,
        out_shape=jax.ShapeDtypeStruct((rows, cols), orig_dtype),
        grid=grid,
        in_specs=[pl.BlockSpec((tr, cols), lambda i: (i, 0))],
        out_specs=pl.BlockSpec((tr, cols), lambda i: (i, 0)),
        input_output_aliases={0: 0},
        compiler_params=pltpu.CompilerParams(
            dimension_semantics=("parallel",),
        ),
    )(x2d)

    out_flat = out2d.reshape(-1)
    if n_pad:
        out_flat = out_flat[:n]
    return out_flat.reshape(orig_shape)


if __name__ == "__main__":
    key = jax.random.PRNGKey(0)
    # Small NCHW input consistent with typical CNN feature-extractor usage.
    x = jax.random.normal(key, (2, 4, 16, 16), dtype=jnp.float32)

    y = identity_pallas(x)
    y = jax.block_until_ready(y)

    assert y.shape == x.shape, f"shape mismatch: {y.shape} vs {x.shape}"
    assert y.dtype == x.dtype, f"dtype mismatch: {y.dtype} vs {x.dtype}"
    assert bool(jnp.array_equal(y, x)), "identity output does not match input"

    print("KERNEL_OK")
</pallas_src>

<mosaic_0001>
module attributes {stable_mosaic.version = 11 : i64} {
  func.func @_identity_kernel(%arg0: i32, %arg1: memref<8x512xf32, #tpu.memory_space<vmem>>, %arg2: memref<8x512xf32, #tpu.memory_space<vmem>>) attributes {dimension_semantics = [#tpu.dimension_semantics<parallel>], iteration_bounds = array<i64: 1>, scalar_prefetch = 0 : i64, scratch_operands = 0 : i64, tpu.core_type = #tpu.core_type<tc>, window_params = [{transform_indices = @transform_0, window_bounds = array<i64: 8, 512>}, {transform_indices = @transform_1, window_bounds = array<i64: 8, 512>}]} {
    %c0 = arith.constant 0 : index
    %c0_0 = arith.constant 0 : index
    %0 = vector.load %arg1[%c0, %c0_0] : memref<8x512xf32, #tpu.memory_space<vmem>>, vector<8x512xf32>
    %c0_1 = arith.constant 0 : index
    %c0_2 = arith.constant 0 : index
    %1 = vector.load %arg2[%c0_1, %c0_2] : memref<8x512xf32, #tpu.memory_space<vmem>>, vector<8x512xf32>
    tpu.vector_store %arg2[%c0_1, %c0_2], %0 {strides = array<i32>} : memref<8x512xf32, #tpu.memory_space<vmem>>, vector<8x512xf32>,
    return
  }
  func.func @transform_0(%arg0: i32) -> (i32, i32) {
    %c0_i32 = arith.constant 0 : i32
    %c0_i32_0 = arith.constant 0 : i32
    return %arg0, %c0_i32 : i32, i32
  }
  func.func @transform_1(%arg0: i32) -> (i32, i32) {
    %c0_i32 = arith.constant 0 : i32
    %c0_i32_0 = arith.constant 0 : i32
    return %arg0, %c0_i32 : i32, i32
  }
}

</mosaic_0001>

<bundles_post_ra>
// kernel: tpu_custom_call.1
= control target key start
LH: loop header
LB: loop body
LE: loop exit
PB: predicated region body
PF: predicated region fallthrough
CT: control target
= control target key end

     0   :  { %6 = vsyncpa [#allocation3], 0  ;;  %s120_s0 = inlined_call_operand.hbm [shape: f32[8,512], index: 0, kind: input, shape index: {}, may-alias: {0,1}]   ;;  %s121_s1 = inlined_call_operand.hbm [shape: f32[8,512], index: 1, kind: output, shape index: {}, may-alias: {0,1}]  }
   0x1   :  { %7 = vsyncpa [#allocation4], 0  ;;  %s13_s8 = sshll.u32 %s120_s0, 4  ;;  %s102_s9 = smov [#allocation2]   ;;  %s14_s8 = int_to_ptr.hbm [resolvable:$true] %s13_s8 }
   0x2   :  { %s15_s10 = sshll.u32 %s102_s9, 4  ;;  %s16_s10 = int_to_ptr.vmem [resolvable:$true] %s15_s10 }
   0x3   :  { %18 = dma.hbm_to_vmem [thread:$0]  %s14_s8, 512, %s16_s10, [#allocation3]  }
   0x4   :  { %98 = dma.done.wait [#allocation3], 512  }
   0x5   :  { %99 = vsyncadd [#allocation3], 4294966784  ;;  %s103_s11 = smov [#allocation5]   ;;  %s38_s15 = sshll.u32 %s121_s1, 4  ;;  %v23_v0 = vld [vmem:[#allocation2] sm:$0xff]  ;;  %v24_v1 = vld [vmem:[#allocation2 + $0x8] sm:$0xff]  ;;  %s39_s15 = int_to_ptr.hbm [resolvable:$true] %s38_s15 }
   0x6   :  { %s36_s12 = sshll.u32 %s103_s11, 4  ;;  %v25_v2 = vld [vmem:[#allocation2 + $0x10] sm:$0xff]  ;;  %27 = vst [vmem:[#allocation5] sm:$0xff] %v23_v0  ;;  %v26_v3 = vld [vmem:[#allocation2 + $0x18] sm:$0xff]  ;;  %s37_s12 = int_to_ptr.vmem [resolvable:$true] %s36_s12 }
   0x7   :  { %28 = vst [vmem:[#allocation5 + $0x8] sm:$0xff] %v24_v1 }
   0x8   :  { %29 = vst [vmem:[#allocation5 + $0x10] sm:$0xff] %v25_v2 }
   0x9   :  { %30 = vst [vmem:[#allocation5 + $0x18] sm:$0xff] %v26_v3 }
   0xa   :  { %41 = dma.vmem_to_hbm [thread:$0]  %s37_s12, 512, %s39_s15, [#allocation4]  }
   0xb   :  { %100 = dma.done.wait [#allocation4], 512  }
   0xc   :  { %101 = vsyncadd [#allocation4], 4294966784 }
   0xd   :  { %46 = vsyncpa [#allocation3], 1 }
   0xe   :  { %47 = vsyncpa [#allocation4], 1 }

</bundles_post_ra>
